<compile_context>
chip_gen: v6e
topology: v6e:2x2x1
jax: 0.10.0
libtpu: 0.0.40
codegen_flags: <defaults>
</compile_context>

<pallas_src>
import functools

import jax
import jax.numpy as jnp
from jax import lax
from jax.experimental import pallas as pl
from jax.experimental.pallas import tpu as pltpu


def _fused_lstm_kernel(num_layer, T, Bp, H, x_ref, *rest):
    """Fused multi-layer LSTM over the full sequence.

    x_ref   : (T*Bp, Din0)  time-major, batch padded to Bp, flattened rows
    rest    : [w_ih_t, w_hh_t, bias] * num_layer, out_ref, scratch...
      w_ih_t: (Din_l, 4H)   input->gates weights (transposed)
      w_hh_t: (H,    4H)    hidden->gates weights (transposed)
      bias  : (1,    4H)    b_ih + b_hh
    out_ref : (T*Bp, H)     final layer hidden sequence
    scratch : gx_sc (T*Bp, 4H), seq_sc (T*Bp, H), h_sc (Bp, H), c_sc (Bp, H)
    """
    w_refs = rest[:3 * num_layer]
    out_ref = rest[3 * num_layer]
    gx_sc, seq_sc, h_sc, c_sc = rest[3 * num_layer + 1:]

    for layer in range(num_layer):
        wih_ref = w_refs[3 * layer + 0]
        whh_ref = w_refs[3 * layer + 1]
        b_ref = w_refs[3 * layer + 2]

        # --- Hoisted input projection: one batched MXU matmul per layer. ---
        inp = x_ref[...] if layer == 0 else seq_sc[...]          # (T*Bp, Din_l)
        gx_sc[...] = (
            jnp.dot(inp, wih_ref[...], preferred_element_type=jnp.float32)
            + b_ref[...]
        )                                                        # (T*Bp, 4H)

        # --- Reset recurrent state for this layer. ---
        h_sc[...] = jnp.zeros_like(h_sc)
        c_sc[...] = jnp.zeros_like(c_sc)

        # --- Sequential recurrence: only h @ W_hh on the critical path. ---
        @pl.loop(0, T)
        def _(t):
            row = pl.multiple_of(t * Bp, Bp)                     # sublane-aligned
            gates = gx_sc[pl.ds(row, Bp), :] + jnp.dot(
                h_sc[...], whh_ref[...],
                preferred_element_type=jnp.float32)              # (Bp, 4H)

            # Lane-dense activations: sigmoid for i/f/o lanes, tanh for g lanes.
            lane = lax.broadcasted_iota(jnp.int32, gates.shape, 1)
            is_g = (lane >= 2 * H) & (lane < 3 * H)
            acts = jnp.where(is_g, jnp.tanh(gates), jax.nn.sigmoid(gates))

            i_g = acts[:, 0 * H:1 * H]
            f_g = acts[:, 1 * H:2 * H]
            g_g = acts[:, 2 * H:3 * H]
            o_g = acts[:, 3 * H:4 * H]

            c_new = f_g * c_sc[...] + i_g * g_g
            h_new = o_g * jnp.tanh(c_new)

            c_sc[...] = c_new
            h_sc[...] = h_new
            # Safe to overwrite seq_sc in place: this layer's input contribution
            # was already captured in gx_sc before the recurrence started.
            seq_sc[pl.ds(row, Bp), :] = h_new

    # Single contiguous store of the final layer's sequence.
    out_ref[...] = seq_sc[...]


def temporal_filter_forward(x_btd, params):
    """Pallas implementation of TemporalFilter.forward.

    x_btd: (B, T, input_size) — PyTorch batch_first layout.
    params: list (per layer) of dicts with 'w_ih' (4H, Din), 'w_hh' (4H, H),
            'b_ih' (4H,), 'b_hh' (4H,)  — PyTorch LSTM parameter shapes.
    Returns {'rnn': (B, T, num_source)}.
    """
    B, T, Din0 = x_btd.shape
    H = params[0]["w_hh"].shape[1]
    L = len(params)
    Bp = ((B + 7) // 8) * 8                                     # sublane granule

    # Time-major, pad batch to Bp, flatten (T, Bp) -> rows.
    x_tbd = jnp.transpose(x_btd, (1, 0, 2)).astype(jnp.float32)  # (T, B, Din0)
    x_pad = jnp.pad(x_tbd, ((0, 0), (0, Bp - B), (0, 0)))
    x2d = x_pad.reshape(T * Bp, Din0)

    inputs = [x2d]
    in_specs = [pl.BlockSpec((T * Bp, Din0), lambda i: (0, 0))]
    for p in params:
        w_ih_t = jnp.transpose(p["w_ih"], (1, 0)).astype(jnp.float32)  # (Din_l, 4H)
        w_hh_t = jnp.transpose(p["w_hh"], (1, 0)).astype(jnp.float32)  # (H,   4H)
        bias = (p["b_ih"] + p["b_hh"]).reshape(1, 4 * H).astype(jnp.float32)
        inputs += [w_ih_t, w_hh_t, bias]
        in_specs += [
            pl.BlockSpec(w_ih_t.shape, lambda i: (0, 0)),
            pl.BlockSpec(w_hh_t.shape, lambda i: (0, 0)),
            pl.BlockSpec(bias.shape, lambda i: (0, 0)),
        ]

    kernel = functools.partial(_fused_lstm_kernel, L, T, Bp, H)

    out2d = pl.pallas_call(
        kernel,
        out_shape=jax.ShapeDtypeStruct((T * Bp, H), jnp.float32),
        grid_spec=pltpu.PrefetchScalarGridSpec(
            num_scalar_prefetch=0,
            grid=(1,),
            in_specs=in_specs,
            out_specs=pl.BlockSpec((T * Bp, H), lambda i: (0, 0)),
            scratch_shapes=[
                pltpu.VMEM((T * Bp, 4 * H), jnp.float32),   # precomputed x-gates
                pltpu.VMEM((T * Bp, H), jnp.float32),       # layer activation seq
                pltpu.VMEM((Bp, H), jnp.float32),           # h state
                pltpu.VMEM((Bp, H), jnp.float32),           # c state
            ],
        ),
        compiler_params=pltpu.CompilerParams(
            dimension_semantics=("arbitrary",)),
    )(*inputs)

    out = out2d.reshape(T, Bp, H)[:, :B, :]                     # (T, B, H)
    return {"rnn": jnp.transpose(out, (1, 0, 2))}               # (B, T, H)


# ---------------------------------------------------------------------------
# Pure-JAX reference (lax.scan) for correctness check.
# ---------------------------------------------------------------------------
def _reference_forward(x_btd, params):
    h = jnp.transpose(x_btd, (1, 0, 2)).astype(jnp.float32)     # (T, B, D)
    for p in params:
        w_ih_t = jnp.transpose(p["w_ih"], (1, 0))
        w_hh_t = jnp.transpose(p["w_hh"], (1, 0))
        bias = p["b_ih"] + p["b_hh"]
        B = h.shape[1]
        H = p["w_hh"].shape[1]

        def step(carry, x_t):
            h_prev, c_prev = carry
            gates = x_t @ w_ih_t + h_prev @ w_hh_t + bias
            i_g = jax.nn.sigmoid(gates[:, 0 * H:1 * H])
            f_g = jax.nn.sigmoid(gates[:, 1 * H:2 * H])
            g_g = jnp.tanh(gates[:, 2 * H:3 * H])
            o_g = jax.nn.sigmoid(gates[:, 3 * H:4 * H])
            c_new = f_g * c_prev + i_g * g_g
            h_new = o_g * jnp.tanh(c_new)
            return (h_new, c_new), h_new

        init = (jnp.zeros((B, H), jnp.float32), jnp.zeros((B, H), jnp.float32))
        _, h = lax.scan(step, init, h)
    return {"rnn": jnp.transpose(h, (1, 0, 2))}


def _init_params(key, input_size, num_source, num_layer):
    """Deterministic synthetic LSTM parameters (PyTorch-shaped)."""
    params = []
    H = num_source
    bound = 1.0 / jnp.sqrt(jnp.float32(H))
    for layer in range(num_layer):
        din = input_size if layer == 0 else H
        key, k1, k2, k3, k4 = jax.random.split(key, 5)
        params.append({
            "w_ih": jax.random.uniform(k1, (4 * H, din), jnp.float32, -bound, bound),
            "w_hh": jax.random.uniform(k2, (4 * H, H), jnp.float32, -bound, bound),
            "b_ih": jax.random.uniform(k3, (4 * H,), jnp.float32, -bound, bound),
            "b_hh": jax.random.uniform(k4, (4 * H,), jnp.float32, -bound, bound),
        })
    return params


if __name__ == "__main__":
    # Small shapes implied by forward: x is (batch, seq, input_size).
    batch, seq, input_size, num_source, num_layer = 2, 8, 16, 32, 2

    key = jax.random.PRNGKey(0)
    key, kx = jax.random.split(key)
    x = jax.random.normal(kx, (batch, seq, input_size), jnp.float32)

    params = _init_params(key, input_size, num_source, num_layer)

    out = temporal_filter_forward(x, params)
    out_rnn = jax.block_until_ready(out["rnn"])

    ref = _reference_forward(x, params)["rnn"]
    assert out_rnn.shape == (batch, seq, num_source)
    assert jnp.allclose(out_rnn, ref, atol=1e-5, rtol=1e-5)

    print("KERNEL_OK")
</pallas_src>

<mosaic_0001>
module attributes {stable_mosaic.version = 11 : i64} {
  func.func @_fused_lstm_kernel(%arg0: i32, %arg1: memref<64x16xf32, #tpu.memory_space<vmem>>, %arg2: memref<16x128xf32, #tpu.memory_space<vmem>>, %arg3: memref<32x128xf32, #tpu.memory_space<vmem>>, %arg4: memref<1x128xf32, #tpu.memory_space<vmem>>, %arg5: memref<32x128xf32, #tpu.memory_space<vmem>>, %arg6: memref<32x128xf32, #tpu.memory_space<vmem>>, %arg7: memref<1x128xf32, #tpu.memory_space<vmem>>, %arg8: memref<64x32xf32, #tpu.memory_space<vmem>>, %arg9: memref<64x128xf32, #tpu.memory_space<vmem>>, %arg10: memref<64x32xf32, #tpu.memory_space<vmem>>, %arg11: memref<8x32xf32, #tpu.memory_space<vmem>>, %arg12: memref<8x32xf32, #tpu.memory_space<vmem>>) attributes {dimension_semantics = [#tpu.dimension_semantics<arbitrary>], iteration_bounds = array<i64: 1>, scalar_prefetch = 0 : i64, scratch_operands = 4 : i64, tpu.core_type = #tpu.core_type<tc>, window_params = [{pipeline_mode = #tpu.pipeline_mode<synchronous>, transform_indices = @transform_0, window_bounds = array<i64: 64, 16>}, {pipeline_mode = #tpu.pipeline_mode<synchronous>, transform_indices = @transform_1, window_bounds = array<i64: 16, 128>}, {pipeline_mode = #tpu.pipeline_mode<synchronous>, transform_indices = @transform_2, window_bounds = array<i64: 32, 128>}, {pipeline_mode = #tpu.pipeline_mode<synchronous>, transform_indices = @transform_3, window_bounds = array<i64: 1, 128>}, {pipeline_mode = #tpu.pipeline_mode<synchronous>, transform_indices = @transform_4, window_bounds = array<i64: 32, 128>}, {pipeline_mode = #tpu.pipeline_mode<synchronous>, transform_indices = @transform_5, window_bounds = array<i64: 32, 128>}, {pipeline_mode = #tpu.pipeline_mode<synchronous>, transform_indices = @transform_6, window_bounds = array<i64: 1, 128>}, {pipeline_mode = #tpu.pipeline_mode<synchronous>, transform_indices = @transform_7, window_bounds = array<i64: 64, 32>}]} {
    %c0 = arith.constant 0 : index
    %c0_0 = arith.constant 0 : index
    %0 = vector.load %arg1[%c0, %c0_0] : memref<64x16xf32, #tpu.memory_space<vmem>>, vector<64x16xf32>
    %c0_1 = arith.constant 0 : index
    %c0_2 = arith.constant 0 : index
    %1 = vector.load %arg2[%c0_1, %c0_2] : memref<16x128xf32, #tpu.memory_space<vmem>>, vector<16x128xf32>
    %cst = arith.constant dense<0.000000e+00> : vector<64x128xf32>
    %2 = tpu.matmul %0, %1, %cst {dimension_numbers = #tpu.dot_dimension_numbers<[1], [0], [0], [1], [0, 0, 1, 1], [], []>} : vector<64x16xf32>, vector<16x128xf32>, vector<64x128xf32> -> vector<64x128xf32>
    %c0_3 = arith.constant 0 : index
    %c0_4 = arith.constant 0 : index
    %3 = vector.load %arg4[%c0_3, %c0_4] : memref<1x128xf32, #tpu.memory_space<vmem>>, vector<1x128xf32>
    %4 = vector.broadcast %3 : vector<1x128xf32> to vector<64x128xf32>
    %5 = arith.addf %2, %4 : vector<64x128xf32>
    %c0_5 = arith.constant 0 : index
    %c0_6 = arith.constant 0 : index
    %6 = vector.load %arg9[%c0_5, %c0_6] : memref<64x128xf32, #tpu.memory_space<vmem>>, vector<64x128xf32>
    tpu.vector_store %arg9[%c0_5, %c0_6], %5 {strides = array<i32>} : memref<64x128xf32, #tpu.memory_space<vmem>>, vector<64x128xf32>,
    %cst_7 = arith.constant 0.000000e+00 : f32
    %7 = vector.broadcast %cst_7 : f32 to vector<8x32xf32>
    %c0_8 = arith.constant 0 : index
    %c0_9 = arith.constant 0 : index
    %8 = vector.load %arg11[%c0_8, %c0_9] : memref<8x32xf32, #tpu.memory_space<vmem>>, vector<8x32xf32>
    tpu.vector_store %arg11[%c0_8, %c0_9], %7 {strides = array<i32>} : memref<8x32xf32, #tpu.memory_space<vmem>>, vector<8x32xf32>,
    %cst_10 = arith.constant 0.000000e+00 : f32
    %9 = vector.broadcast %cst_10 : f32 to vector<8x32xf32>
    %c0_11 = arith.constant 0 : index
    %c0_12 = arith.constant 0 : index
    %10 = vector.load %arg12[%c0_11, %c0_12] : memref<8x32xf32, #tpu.memory_space<vmem>>, vector<8x32xf32>
    tpu.vector_store %arg12[%c0_11, %c0_12], %9 {strides = array<i32>} : memref<8x32xf32, #tpu.memory_space<vmem>>, vector<8x32xf32>,
    %c0_i32 = arith.constant 0 : i32
    %c8_i32 = arith.constant 8 : i32
    %11 = arith.addi %c0_i32, %c8_i32 : i32
    %c1_i32 = arith.constant 1 : i32
    scf.for %arg13 = %c0_i32 to %11 step %c1_i32  : i32 {
      %c1_i32_37 = arith.constant 1 : i32
      %26 = arith.muli %arg13, %c1_i32_37 : i32
      %c0_i32_38 = arith.constant 0 : i32
      %27 = arith.addi %c0_i32_38, %26 : i32
      %c8_i32_39 = arith.constant 8 : i32
      %28 = arith.muli %27, %c8_i32_39 : i32
      %29 = tpu.assume_multiple %28, 8 : i32
      %30 = arith.index_cast %29 : i32 to index
      %c0_40 = arith.constant 0 : index
      %31 = vector.load %arg9[%30, %c0_40] : memref<64x128xf32, #tpu.memory_space<vmem>>, vector<8x128xf32>
      %c0_41 = arith.constant 0 : index
      %c0_42 = arith.constant 0 : index
      %32 = vector.load %arg11[%c0_41, %c0_42] : memref<8x32xf32, #tpu.memory_space<vmem>>, vector<8x32xf32>
      %c0_43 = arith.constant 0 : index
      %c0_44 = arith.constant 0 : index
      %33 = vector.load %arg3[%c0_43, %c0_44] : memref<32x128xf32, #tpu.memory_space<vmem>>, vector<32x128xf32>
      %cst_45 = arith.constant dense<0.000000e+00> : vector<8x128xf32>
      %34 = tpu.matmul %32, %33, %cst_45 {dimension_numbers = #tpu.dot_dimension_numbers<[1], [0], [0], [1], [0, 0, 1, 1], [], []>} : vector<8x32xf32>, vector<32x128xf32>, vector<8x128xf32> -> vector<8x128xf32>
      %35 = arith.addf %31, %34 : vector<8x128xf32>
      %36 = tpu.iota {dimensions = array<i32: 1>} : vector<8x128xi32>
      %c64_i32 = arith.constant 64 : i32
      %37 = vector.broadcast %c64_i32 : i32 to vector<8x128xi32>
      %38 = arith.cmpi sge, %36, %37 : vector<8x128xi32>
      %c96_i32 = arith.constant 96 : i32
      %39 = vector.broadcast %c96_i32 : i32 to vector<8x128xi32>
      %40 = arith.cmpi slt, %36, %39 : vector<8x128xi32>
      %41 = arith.andi %38, %40 : vector<8x128xi1>
      %42 = math.tanh %35 : vector<8x128xf32>
      %43 = arith.negf %35 : vector<8x128xf32>
      %44 = math.exp %43 : vector<8x128xf32>
      %cst_46 = arith.constant 1.000000e+00 : f32
      %45 = vector.broadcast %cst_46 : f32 to vector<8x128xf32>
      %46 = arith.addf %45, %44 : vector<8x128xf32>
      %47 = arith.divf %45, %46 : vector<8x128xf32>
      %48 = arith.select %41, %42, %47 : vector<8x128xi1>, vector<8x128xf32>
      %49 = vector.extract_strided_slice %48 {offsets = [0, 0], sizes = [8, 32], strides = [1, 1]} : vector<8x128xf32> to vector<8x32xf32>
      %50 = vector.extract_strided_slice %48 {offsets = [0, 32], sizes = [8, 32], strides = [1, 1]} : vector<8x128xf32> to vector<8x32xf32>
      %51 = vector.extract_strided_slice %48 {offsets = [0, 64], sizes = [8, 32], strides = [1, 1]} : vector<8x128xf32> to vector<8x32xf32>
      %52 = vector.extract_strided_slice %48 {offsets = [0, 96], sizes = [8, 32], strides = [1, 1]} : vector<8x128xf32> to vector<8x32xf32>
      %c0_47 = arith.constant 0 : index
      %c0_48 = arith.constant 0 : index
      %53 = vector.load %arg12[%c0_47, %c0_48] : memref<8x32xf32, #tpu.memory_space<vmem>>, vector<8x32xf32>
      %54 = arith.mulf %50, %53 : vector<8x32xf32>
      %55 = arith.mulf %49, %51 : vector<8x32xf32>
      %56 = arith.addf %54, %55 : vector<8x32xf32>
      %57 = math.tanh %56 : vector<8x32xf32>
      %58 = arith.mulf %52, %57 : vector<8x32xf32>
      %c0_49 = arith.constant 0 : index
      %c0_50 = arith.constant 0 : index
      %59 = vector.load %arg12[%c0_49, %c0_50] : memref<8x32xf32, #tpu.memory_space<vmem>>, vector<8x32xf32>
      tpu.vector_store %arg12[%c0_49, %c0_50], %56 {strides = array<i32>} : memref<8x32xf32, #tpu.memory_space<vmem>>, vector<8x32xf32>,
      %c0_51 = arith.constant 0 : index
      %c0_52 = arith.constant 0 : index
      %60 = vector.load %arg11[%c0_51, %c0_52] : memref<8x32xf32, #tpu.memory_space<vmem>>, vector<8x32xf32>
      tpu.vector_store %arg11[%c0_51, %c0_52], %58 {strides = array<i32>} : memref<8x32xf32, #tpu.memory_space<vmem>>, vector<8x32xf32>,
      %61 = arith.index_cast %29 : i32 to index
      %c0_53 = arith.constant 0 : index
      %62 = vector.load %arg10[%61, %c0_53] : memref<64x32xf32, #tpu.memory_space<vmem>>, vector<8x32xf32>
      tpu.vector_store %arg10[%61, %c0_53], %58 {strides = array<i32>} : memref<64x32xf32, #tpu.memory_space<vmem>>, vector<8x32xf32>,
    }
    %c8_i32_13 = arith.constant 8 : i32
    %c0_14 = arith.constant 0 : index
    %c0_15 = arith.constant 0 : index
    %12 = vector.load %arg10[%c0_14, %c0_15] : memref<64x32xf32, #tpu.memory_space<vmem>>, vector<64x32xf32>
    %c0_16 = arith.constant 0 : index
    %c0_17 = arith.constant 0 : index
    %13 = vector.load %arg5[%c0_16, %c0_17] : memref<32x128xf32, #tpu.memory_space<vmem>>, vector<32x128xf32>
    %cst_18 = arith.constant dense<0.000000e+00> : vector<64x128xf32>
    %14 = tpu.matmul %12, %13, %cst_18 {dimension_numbers = #tpu.dot_dimension_numbers<[1], [0], [0], [1], [0, 0, 1, 1], [], []>} : vector<64x32xf32>, vector<32x128xf32>, vector<64x128xf32> -> vector<64x128xf32>
    %c0_19 = arith.constant 0 : index
    %c0_20 = arith.constant 0 : index
    %15 = vector.load %arg7[%c0_19, %c0_20] : memref<1x128xf32, #tpu.memory_space<vmem>>, vector<1x128xf32>
    %16 = vector.broadcast %15 : vector<1x128xf32> to vector<64x128xf32>
    %17 = arith.addf %14, %16 : vector<64x128xf32>
    %c0_21 = arith.constant 0 : index
    %c0_22 = arith.constant 0 : index
    %18 = vector.load %arg9[%c0_21, %c0_22] : memref<64x128xf32, #tpu.memory_space<vmem>>, vector<64x128xf32>
    tpu.vector_store %arg9[%c0_21, %c0_22], %17 {strides = array<i32>} : memref<64x128xf32, #tpu.memory_space<vmem>>, vector<64x128xf32>,
    %cst_23 = arith.constant 0.000000e+00 : f32
    %19 = vector.broadcast %cst_23 : f32 to vector<8x32xf32>
    %c0_24 = arith.constant 0 : index
    %c0_25 = arith.constant 0 : index
    %20 = vector.load %arg11[%c0_24, %c0_25] : memref<8x32xf32, #tpu.memory_space<vmem>>, vector<8x32xf32>
    tpu.vector_store %arg11[%c0_24, %c0_25], %19 {strides = array<i32>} : memref<8x32xf32, #tpu.memory_space<vmem>>, vector<8x32xf32>,
    %cst_26 = arith.constant 0.000000e+00 : f32
    %21 = vector.broadcast %cst_26 : f32 to vector<8x32xf32>
    %c0_27 = arith.constant 0 : index
    %c0_28 = arith.constant 0 : index
    %22 = vector.load %arg12[%c0_27, %c0_28] : memref<8x32xf32, #tpu.memory_space<vmem>>, vector<8x32xf32>
    tpu.vector_store %arg12[%c0_27, %c0_28], %21 {strides = array<i32>} : memref<8x32xf32, #tpu.memory_space<vmem>>, vector<8x32xf32>,
    %c0_i32_29 = arith.constant 0 : i32
    %c8_i32_30 = arith.constant 8 : i32
    %23 = arith.addi %c0_i32_29, %c8_i32_30 : i32
    %c1_i32_31 = arith.constant 1 : i32
    scf.for %arg13 = %c0_i32_29 to %23 step %c1_i32_31  : i32 {
      %c1_i32_37 = arith.constant 1 : i32
      %26 = arith.muli %arg13, %c1_i32_37 : i32
      %c0_i32_38 = arith.constant 0 : i32
      %27 = arith.addi %c0_i32_38, %26 : i32
      %c8_i32_39 = arith.constant 8 : i32
      %28 = arith.muli %27, %c8_i32_39 : i32
      %29 = tpu.assume_multiple %28, 8 : i32
      %30 = arith.index_cast %29 : i32 to index
      %c0_40 = arith.constant 0 : index
      %31 = vector.load %arg9[%30, %c0_40] : memref<64x128xf32, #tpu.memory_space<vmem>>, vector<8x128xf32>
      %c0_41 = arith.constant 0 : index
      %c0_42 = arith.constant 0 : index
      %32 = vector.load %arg11[%c0_41, %c0_42] : memref<8x32xf32, #tpu.memory_space<vmem>>, vector<8x32xf32>
      %c0_43 = arith.constant 0 : index
      %c0_44 = arith.constant 0 : index
      %33 = vector.load %arg6[%c0_43, %c0_44] : memref<32x128xf32, #tpu.memory_space<vmem>>, vector<32x128xf32>
      %cst_45 = arith.constant dense<0.000000e+00> : vector<8x128xf32>
      %34 = tpu.matmul %32, %33, %cst_45 {dimension_numbers = #tpu.dot_dimension_numbers<[1], [0], [0], [1], [0, 0, 1, 1], [], []>} : vector<8x32xf32>, vector<32x128xf32>, vector<8x128xf32> -> vector<8x128xf32>
      %35 = arith.addf %31, %34 : vector<8x128xf32>
      %36 = tpu.iota {dimensions = array<i32: 1>} : vector<8x128xi32>
      %c64_i32 = arith.constant 64 : i32
      %37 = vector.broadcast %c64_i32 : i32 to vector<8x128xi32>
      %38 = arith.cmpi sge, %36, %37 : vector<8x128xi32>
      %c96_i32 = arith.constant 96 : i32
      %39 = vector.broadcast %c96_i32 : i32 to vector<8x128xi32>
      %40 = arith.cmpi slt, %36, %39 : vector<8x128xi32>
      %41 = arith.andi %38, %40 : vector<8x128xi1>
      %42 = math.tanh %35 : vector<8x128xf32>
      %43 = arith.negf %35 : vector<8x128xf32>
      %44 = math.exp %43 : vector<8x128xf32>
      %cst_46 = arith.constant 1.000000e+00 : f32
      %45 = vector.broadcast %cst_46 : f32 to vector<8x128xf32>
      %46 = arith.addf %45, %44 : vector<8x128xf32>
      %47 = arith.divf %45, %46 : vector<8x128xf32>
      %48 = arith.select %41, %42, %47 : vector<8x128xi1>, vector<8x128xf32>
      %49 = vector.extract_strided_slice %48 {offsets = [0, 0], sizes = [8, 32], strides = [1, 1]} : vector<8x128xf32> to vector<8x32xf32>
      %50 = vector.extract_strided_slice %48 {offsets = [0, 32], sizes = [8, 32], strides = [1, 1]} : vector<8x128xf32> to vector<8x32xf32>
      %51 = vector.extract_strided_slice %48 {offsets = [0, 64], sizes = [8, 32], strides = [1, 1]} : vector<8x128xf32> to vector<8x32xf32>
      %52 = vector.extract_strided_slice %48 {offsets = [0, 96], sizes = [8, 32], strides = [1, 1]} : vector<8x128xf32> to vector<8x32xf32>
      %c0_47 = arith.constant 0 : index
      %c0_48 = arith.constant 0 : index
      %53 = vector.load %arg12[%c0_47, %c0_48] : memref<8x32xf32, #tpu.memory_space<vmem>>, vector<8x32xf32>
      %54 = arith.mulf %50, %53 : vector<8x32xf32>
      %55 = arith.mulf %49, %51 : vector<8x32xf32>
      %56 = arith.addf %54, %55 : vector<8x32xf32>
      %57 = math.tanh %56 : vector<8x32xf32>
      %58 = arith.mulf %52, %57 : vector<8x32xf32>
      %c0_49 = arith.constant 0 : index
      %c0_50 = arith.constant 0 : index
      %59 = vector.load %arg12[%c0_49, %c0_50] : memref<8x32xf32, #tpu.memory_space<vmem>>, vector<8x32xf32>
      tpu.vector_store %arg12[%c0_49, %c0_50], %56 {strides = array<i32>} : memref<8x32xf32, #tpu.memory_space<vmem>>, vector<8x32xf32>,
      %c0_51 = arith.constant 0 : index
      %c0_52 = arith.constant 0 : index
      %60 = vector.load %arg11[%c0_51, %c0_52] : memref<8x32xf32, #tpu.memory_space<vmem>>, vector<8x32xf32>
      tpu.vector_store %arg11[%c0_51, %c0_52], %58 {strides = array<i32>} : memref<8x32xf32, #tpu.memory_space<vmem>>, vector<8x32xf32>,
      %61 = arith.index_cast %29 : i32 to index
      %c0_53 = arith.constant 0 : index
      %62 = vector.load %arg10[%61, %c0_53] : memref<64x32xf32, #tpu.memory_space<vmem>>, vector<8x32xf32>
      tpu.vector_store %arg10[%61, %c0_53], %58 {strides = array<i32>} : memref<64x32xf32, #tpu.memory_space<vmem>>, vector<8x32xf32>,
    }
    %c8_i32_32 = arith.constant 8 : i32
    %c0_33 = arith.constant 0 : index
    %c0_34 = arith.constant 0 : index
    %24 = vector.load %arg10[%c0_33, %c0_34] : memref<64x32xf32, #tpu.memory_space<vmem>>, vector<64x32xf32>
    %c0_35 = arith.constant 0 : index
    %c0_36 = arith.constant 0 : index
    %25 = vector.load %arg8[%c0_35, %c0_36] : memref<64x32xf32, #tpu.memory_space<vmem>>, vector<64x32xf32>
    tpu.vector_store %arg8[%c0_35, %c0_36], %24 {strides = array<i32>} : memref<64x32xf32, #tpu.memory_space<vmem>>, vector<64x32xf32>,
    return
  }
  func.func @transform_0(%arg0: i32) -> (i32, i32) {
    %c0_i32 = arith.constant 0 : i32
    %c0_i32_0 = arith.constant 0 : i32
    %c0_i32_1 = arith.constant 0 : i32
    return %c0_i32, %c0_i32_0 : i32, i32
  }
  func.func @transform_1(%arg0: i32) -> (i32, i32) {
    %c0_i32 = arith.constant 0 : i32
    %c0_i32_0 = arith.constant 0 : i32
    %c0_i32_1 = arith.constant 0 : i32
    return %c0_i32, %c0_i32_0 : i32, i32
  }
  func.func @transform_2(%arg0: i32) -> (i32, i32) {
    %c0_i32 = arith.constant 0 : i32
    %c0_i32_0 = arith.constant 0 : i32
    %c0_i32_1 = arith.constant 0 : i32
    return %c0_i32, %c0_i32_0 : i32, i32
  }
  func.func @transform_3(%arg0: i32) -> (i32, i32) {
    %c0_i32 = arith.constant 0 : i32
    %c0_i32_0 = arith.constant 0 : i32
    %c0_i32_1 = arith.constant 0 : i32
    return %c0_i32, %c0_i32_0 : i32, i32
  }
  func.func @transform_4(%arg0: i32) -> (i32, i32) {
    %c0_i32 = arith.constant 0 : i32
    %c0_i32_0 = arith.constant 0 : i32
    %c0_i32_1 = arith.constant 0 : i32
    return %c0_i32, %c0_i32_0 : i32, i32
  }
  func.func @transform_5(%arg0: i32) -> (i32, i32) {
    %c0_i32 = arith.constant 0 : i32
    %c0_i32_0 = arith.constant 0 : i32
    %c0_i32_1 = arith.constant 0 : i32
    return %c0_i32, %c0_i32_0 : i32, i32
  }
  func.func @transform_6(%arg0: i32) -> (i32, i32) {
    %c0_i32 = arith.constant 0 : i32
    %c0_i32_0 = arith.constant 0 : i32
    %c0_i32_1 = arith.constant 0 : i32
    return %c0_i32, %c0_i32_0 : i32, i32
  }
  func.func @transform_7(%arg0: i32) -> (i32, i32) {
    %c0_i32 = arith.constant 0 : i32
    %c0_i32_0 = arith.constant 0 : i32
    %c0_i32_1 = arith.constant 0 : i32
    return %c0_i32, %c0_i32_0 : i32, i32
  }
}

</mosaic_0001>

<bundles_post_ra>
// kernel: tpu_custom_call.1
= control target key start
LH: loop header
LB: loop body
LE: loop exit
PB: predicated region body
PF: predicated region fallthrough
CT: control target
= control target key end

     0   :  { %12 = vsyncpa [#allocation7], 0  ;;  %s875_s24 = smov [#allocation6]   ;;  %s1090_s0 = inlined_call_operand.vmem [shape: f32[64,16], index: 0, kind: input, shape index: {}]   ;;  %s1091_s1 = inlined_call_operand.vmem [shape: f32[16,128], index: 1, kind: input, shape index: {}]   ;;  %s1092_s2 = inlined_call_operand.vmem [shape: f32[32,128], index: 2, kind: input, shape index: {}]   ;;  %s1093_s3 = inlined_call_operand.vmem [shape: f32[1,128], index: 3, kind: input, shape index: {}]   ;;  %s1094_s4 = inlined_call_operand.vmem [shape: f32[32,128], index: 4, kind: input, shape index: {}]   ;;  %s1095_s5 = inlined_call_operand.hbm [shape: f32[32,128], index: 5, kind: input, shape index: {}]   ;;  %s1096_s6 = inlined_call_operand.vmem [shape: f32[1,128], index: 6, kind: input, shape index: {}]   ;;  %s1097_s7 = inlined_call_operand.vmem [shape: f32[64,32], index: 7, kind: output, shape index: {}]  }
   0x1   :  { %s28_s25 = sshll.u32 %s875_s24, 4  ;;  %s29_s25 = int_to_ptr.vmem [resolvable:$true] %s28_s25 }
   0x2   :  { %s845_s26 = scalar_lea.vmem %s29_s25, 512  ;;  %p850_p1 = scmp.lt.s32.totalorder %s29_s25, %s29_s25 }
   0x3   :  { %p846_p0 = scmp.ne.s32.totalorder %s29_s25, %s845_s26  ;;  %p851_p2 = scmp.lt.s32.totalorder %s845_s26, %s845_s26 }
   0x5   :  { %p852_p3 = por %p851_p2, %p850_p1 }
   0x7   :  { %p853_p4 = pnand %p852_p3, %p846_p0 }
   0x9   :  { %856 = shalt.err (!%p853_p4)
}
   0xa   :  { %s876_s27 = smov 128   ;;  %s877_s28 = smov 8  }
   0xb   :  { %34 = dma.hbm_to_vmem [thread:$0]  %s1095_s5, 512, %s29_s25, [#allocation7], %s876_s27, %s876_s27, %s877_s28  }
   0xc   :  { %865 = dma.done.wait [#allocation7], 512  }
   0xd   :  { %866 = vsyncadd [#allocation7], 4294966784  ;;  %vm195_vm0 = vcmask 261120   ;;  %v878_v0 = vmov 0.0   ;;  %v49_v1 = vld [vmem:[%s1091_s1 + $0x8] sm:$0xff]  ;;  %v48_v2 = vld [vmem:[%s1091_s1] sm:$0xff] }
   0xe   :  { %196 = vst.msk [vmem:[#allocation4] sm:$0xff] %vm195_vm0, %v878_v0  ;;  %197 = vst.msk [vmem:[#allocation5] sm:$0xff] %vm195_vm0, %v878_v0  ;;  %721 = vmatprep.subr.mxu0 %v49_v1  ;;  %779 = vmatprep.subr.mxu1 %v49_v1  ;;  %v40_v3 = vld [vmem:[%s1090_s0] sm:$0xff]  ;;  %vm57_vm1 = vcmask 130048   ;;  %v41_v5 = vld [vmem:[%s1090_s0 + $0x8] sm:$0xff] }
   0xf   :  { %722 = vmatpush3.msra.mxu0 %v49_v1  ;;  %781 = vmatpush3.msra.mxu1 %v49_v1  ;;  %v44_v4 = vld [vmem:[%s1090_s0 + $0x20] sm:$0xff]  ;;  %v45_v6 = vld [vmem:[%s1090_s0 + $0x28] sm:$0xff]  ;;  %v42_v7 = vld [vmem:[%s1090_s0 + $0x10] sm:$0xff] }
  0x10   :  { %723 = vmatprep.subr.mxu0 %v48_v2  ;;  %780 = vmatprep.subr.mxu1 %v48_v2  ;;  %v46_v8 = vld [vmem:[%s1090_s0 + $0x30] sm:$0xff]  ;;  %v43_v9 = vld [vmem:[%s1090_s0 + $0x18] sm:$0xff]  ;;  %v665_v11 = vld [vmem:[%s1093_s3] ss:$0 sm:$0xff] }
  0x11   :  { %724 = vmatpush3.msra.mxu0 %v48_v2  ;;  %782 = vmatpush3.msra.mxu1 %v48_v2  ;;  %v47_v10 = vld [vmem:[%s1090_s0 + $0x38] sm:$0xff]  ;;  %s977_s0 = smov 0  }
  0x12   :  { %725 = vmatprep.mubr.msk.f32.mxu0 %vm57_vm1, %v40_v3  ;;  %731 = vmatprep.mubr.msk.f32.mxu1 %vm57_vm1, %v44_v4 }
  0x13   :  { %726 = vmatmul.mubr.msk.f32.vlgmr.msra.gmra.mxu0 %vm57_vm1, %v41_v5  ;;  %732 = vmatmul.mubr.msk.f32.vlgmr.msra.gmra.mxu1 %vm57_vm1, %v45_v6 }
  0x14   :  { %728 = vmatprep.mubr.msk.f32.mxu0 %vm57_vm1, %v42_v7  ;;  %734 = vmatprep.mubr.msk.f32.mxu1 %vm57_vm1, %v46_v8 }
  0x17   :  { %729 = vmatmul.mubr.msk.f32.gmra.mxu0 %vm57_vm1, %v43_v9  ;;  %735 = vmatmul.mubr.msk.f32.gmra.mxu1 %vm57_vm1, %v47_v10 }
  0xd3   :  { %v727_v12 = vpop.f32.mrf.mxu0  ;;  %v733_v13 = vpop.f32.mrf.mxu1 }
  0xd4   :  { %v154_v14 = vadd.f32 %v727_v12, %v665_v11  ;;  %v174_v15 = vadd.f32 %v733_v13, %v665_v11 }
  0xd5   :  { %v148_v16 = vpop.f32.mrf.mxu0  ;;  %v168_v17 = vpop.f32.mrf.mxu1 }
  0xd6   :  { %188 = vst [vmem:[#allocation2 + $0x8] sm:$0xff] %v154_v14  ;;  %192 = vst [vmem:[#allocation2 + $0x28] sm:$0xff] %v174_v15  ;;  %v149_v18 = vadd.f32 %v665_v11, %v148_v16  ;;  %v169_v19 = vadd.f32 %v665_v11, %v168_v17 }
  0xd7   :  { %v730_v20 = vpop.f32.mrf.mxu0  ;;  %v736_v21 = vpop.f32.mrf.mxu1 }
  0xd8   :  { %187 = vst [vmem:[#allocation2] sm:$0xff] %v149_v18  ;;  %191 = vst [vmem:[#allocation2 + $0x20] sm:$0xff] %v169_v19  ;;  %v164_v22 = vadd.f32 %v730_v20, %v665_v11  ;;  %v184_v23 = vadd.f32 %v736_v21, %v665_v11 }
  0xd9   :  { %v158_v24 = vpop.f32.mrf.mxu0  ;;  %v178_v25 = vpop.f32.mrf.mxu1 }
  0xda   :  { %190 = vst [vmem:[#allocation2 + $0x18] sm:$0xff] %v164_v22  ;;  %194 = vst [vmem:[#allocation2 + $0x38] sm:$0xff] %v184_v23  ;;  %v159_v26 = vadd.f32 %v665_v11, %v158_v24  ;;  %v179_v27 = vadd.f32 %v665_v11, %v178_v25 }
  0xdc   :  { %189 = vst [vmem:[#allocation2 + $0x10] sm:$0xff] %v159_v26  ;;  %193 = vst [vmem:[#allocation2 + $0x30] sm:$0xff] %v179_v27 }
  0xdd LB: > { %v211_v28 = vld [vmem:[%s1092_s2 + $0x18] sm:$0xff]  ;;  %v879_v29 = vmov 0.0   ;;  %v210_v30 = vld [vmem:[%s1092_s2 + $0x10] sm:$0xff]  ;;  %vm880_vm2 = vmmov 0   ;;  %v209_v31 = vld [vmem:[%s1092_s2 + $0x8] sm:$0xff]  ;;  %s674_s5 = sshll.u32 %s869_s0, 3  ;;  %v286_v41 = vlaneseq  ;;  %s869_s0 = sphi %s977_s0, %s203_s0  }
  0xde   : > { %737 = vmatprep.subr.mxu0 %v879_v29  ;;  %745 = vmatprep.mubr.msk.f32.mxu0 %vm880_vm2, %v879_v29  ;;  %v208_v32 = vld [vmem:[%s1092_s2] sm:$0xff]  ;;  %s205_s12 = scalar_lea.vmem [#allocation2], %s674_s5  ;;  %s881_s13 = smov 64   ;;  %v299_v47 = vld [vmem:[#allocation5] sm:$0xff] }
  0xdf   : > { %738 = vmatpush3.msra.mxu0 %v211_v28  ;;  %v207_v33 = vld [vmem:[#allocation4] sm:$0xff]  ;;  %v287_v42 = vand.u32 127, %v286_v41  ;;  %s882_s14 = smov 32   ;;  %s883_s15 = smov 96  }
  0xe0   : > { %739 = vmatprep.subr.mxu0 %v879_v29  ;;  %s331_s16 = scalar_lea.vmem [#allocation3], %s674_s5  ;;  %s203_s0 = sadd.s32 1, %s869_s0  }
  0xe1   : > { %740 = vmatpush3.msra.mxu0 %v210_v30  ;;  %vm288_vm3 = vcmp.ge.s32.totalorder %v287_v42, 64  ;;  %vm289_vm4 = vcmp.lt.s32.totalorder %v287_v42, 96  ;;  %p200_p5 = scmp.ge.s32.totalorder %s203_s0, 8  }
  0xe2   : > { %741 = vmatprep.subr.mxu0 %v879_v29  ;;  %vm998_vm5 = vmand %vm288_vm3, %vm289_vm4  ;;  %v344_v59 = vld [vmem:[%s1094_s4 + $0x18] sm:$0xff] (%p200_p5)  ;;  %v343_v60 = vld [vmem:[%s1094_s4 + $0x10] sm:$0xff] (%p200_p5) }
  0xe3   : > { %742 = vmatpush3.msra.mxu0 %v209_v31  ;;  %v206_v34 = vld [vmem:[%s205_s12] sm:$0xff]  ;;  %783 = vmatprep.subr.mxu1 (%p200_p5), %v344_v59  ;;  %v342_v61 = vld [vmem:[%s1094_s4 + $0x8] sm:$0xff] (%p200_p5) }
  0xe4   : > { %743 = vmatprep.subr.mxu0 %v879_v29  ;;  %787 = vmatpush3.msra.mxu1 (%p200_p5), %v344_v59  ;;  %v341_v62 = vld [vmem:[%s1094_s4] sm:$0xff] (%p200_p5) }
  0xe5   : > { %744 = vmatpush3.msra.mxu0 %v208_v32  ;;  %784 = vmatprep.subr.mxu1 (%p200_p5), %v343_v60  ;;  %v677_v7 = vld [vmem:[%s1096_s6] ss:$0 sm:$0xff] (%p200_p5)  ;;  %s1039_s6 = smov (%p200_p5), 0  }
  0xe6   : > { %746 = vmatmul.mubr.msk.f32.vlgmr.msra.gmra.mxu0 %vm195_vm0, %v207_v33  ;;  %748 = vmatprep.subr.mxu0 (%p200_p5), %v344_v59 }
  0xe7   :  { %749 = vmatpush3.msra.mxu0 (%p200_p5), %v344_v59  ;;  %788 = vmatpush3.msra.mxu1 (%p200_p5), %v343_v60 }
  0xe8   :  { %750 = vmatprep.subr.mxu0 (%p200_p5), %v343_v60  ;;  %785 = vmatprep.subr.mxu1 (%p200_p5), %v342_v61 }
  0xe9   :  { %751 = vmatpush3.msra.mxu0 (%p200_p5), %v343_v60  ;;  %789 = vmatpush3.msra.mxu1 (%p200_p5), %v342_v61 }
  0xea   :  { %752 = vmatprep.subr.mxu0 (%p200_p5), %v342_v61  ;;  %786 = vmatprep.subr.mxu1 (%p200_p5), %v341_v62 }
  0xeb   :  { %753 = vmatpush3.msra.mxu0 (%p200_p5), %v342_v61  ;;  %790 = vmatpush3.msra.mxu1 (%p200_p5), %v341_v62 }
  0xec   :  { %754 = vmatprep.subr.mxu0 (%p200_p5), %v341_v62 }
  0xed   :  { %755 = vmatpush3.msra.mxu0 (%p200_p5), %v341_v62 }
 0x1a6   : > { %v281_v35 = vpop.f32.mrf.mxu0 }
 0x1a7   : > { %v285_v36 = vadd.f32 %v281_v35, %v206_v34 }
 0x1a8   : > { %v747_v37 = vpop.f32.mrf.mxu0 }
 0x1a9   : > { %v676_v38 = vmul.f32 -1.442695, %v285_v36 }
 0x1ab   : > { %821 = vpow2.f32 %v676_v38 }
 0x1ac   : > { %823 = vtanh.f32 %v285_v36 }
 0x1b8   : > { %v822_v39 = vpop.eup %821 }
 0x1b9   : > { %v295_v40 = vadd.f32 1.0, %v822_v39  ;;  %v824_v44 = vpop.eup %823 }
 0x1bb   : > { %825 = vrcp.f32 %v295_v40 }
 0x1c8   : > { %v826_v45 = vpop.eup %825 }
 0x1c9   : > { %v298_v46 = vsel %vm998_vm5, %v824_v44, %v826_v45 }
 0x1ca   : > { %306 = vrot.lane.b32.xlu0 %v298_v46, %s881_s13 }
 0x1ce   : > { %301 = vrot.lane.b32.xlu0 %v299_v47, %s882_s14 }
 0x23c   : > { %v307_v48 = vpop.permute.xlu0 %306 }
 0x23d   : > { %v309_v49 = vmul.f32 %v307_v48, %v298_v46 }
 0x23f   : > { %311 = vrot.lane.b32.xlu1 %v309_v49, %s882_s14 }
 0x240   : > { %v302_v50 = vpop.permute.xlu0 %301 }
 0x241   : > { %v304_v51 = vmul.f32 %v302_v50, %v298_v46 }
 0x2b1   : > { %v312_v52 = vpop.permute.xlu1 %311 }
 0x2b2   : > { %v314_v53 = vadd.f32 %v312_v52, %v304_v51 }
 0x2b4   : > { %827 = vtanh.f32 %v314_v53  ;;  %322 = vrot.lane.b32.xlu0 %v314_v53, %s883_s15 }
 0x2c1   : > { %v828_v54 = vpop.eup %827 }
 0x2c2   : > { %317 = vrot.lane.b32.xlu1 %v828_v54, %s881_s13 }
 0x326   : > { %v323_v55 = vpop.permute.xlu0 %322 }
 0x327   : > { %325 = vst.msk [vmem:[#allocation5] sm:$0xff] %vm195_vm0, %v323_v55 }
 0x328   :  { %490 = vst.msk [vmem:[#allocation5] sm:$0xff] (%p200_p5), %vm195_vm0, %v878_v0 }
 0x334   : > { %v318_v56 = vpop.permute.xlu1 %317 }
 0x335   : > { %v320_v57 = vmul.f32 %v318_v56, %v298_v46 }
 0x337   : > { %327 = vrot.lane.b32.xlu1 %v320_v57, %s882_s14 }
 0x3a6   :  { %202 = sbr.rel (!%p200_p5) target bundleno = 221 (0xdd), region = 70 }
 0x3a9   : > { %v328_v58 = vpop.permute.xlu1 %327 }
 0x3aa   : > { %330 = vst.msk [vmem:[#allocation4] sm:$0xff] %vm195_vm0, %v328_v58  ;;  %332 = vst.msk [vmem:[%s331_s16] sm:$0xff] %vm195_vm0, %v328_v58 }
 0x3ab   :  { %489 = vst.msk [vmem:[#allocation4] sm:$0xff] %vm195_vm0, %v878_v0 }
 0x3b1   :  { %v333_v63 = vld [vmem:[#allocation3] sm:$0xff]  ;;  %v334_v1 = vld [vmem:[#allocation3 + $0x8] sm:$0xff]  ;;  %v335_v3 = vld [vmem:[#allocation3 + $0x10] sm:$0xff] }
 0x3b2   :  { %v337_v0 = vld [vmem:[#allocation3 + $0x20] sm:$0xff]  ;;  %v338_v2 = vld [vmem:[#allocation3 + $0x28] sm:$0xff]  ;;  %v339_v4 = vld [vmem:[#allocation3 + $0x30] sm:$0xff]  ;;  %756 = vmatprep.mubr.msk.f32.mxu0 %vm195_vm0, %v333_v63 }
 0x3b3   :  { %762 = vmatprep.mubr.msk.f32.mxu1 %vm195_vm0, %v337_v0  ;;  %757 = vmatmul.mubr.msk.f32.vlgmr.msra.gmra.mxu0 %vm195_vm0, %v334_v1  ;;  %v336_v5 = vld [vmem:[#allocation3 + $0x18] sm:$0xff] }
 0x3b4   :  { %763 = vmatmul.mubr.msk.f32.vlgmr.msra.gmra.mxu1 %vm195_vm0, %v338_v2  ;;  %759 = vmatprep.mubr.msk.f32.mxu0 %vm195_vm0, %v335_v3  ;;  %v340_v6 = vld [vmem:[#allocation3 + $0x38] sm:$0xff] }
 0x3b5   :  { %765 = vmatprep.mubr.msk.f32.mxu1 %vm195_vm0, %v339_v4 }
 0x3b7   :  { %760 = vmatmul.mubr.msk.f32.gmra.mxu0 %vm195_vm0, %v336_v5 }
 0x3b8   :  { %766 = vmatmul.mubr.msk.f32.gmra.mxu1 %vm195_vm0, %v340_v6 }
 0x473   :  { %v758_v8 = vpop.f32.mrf.mxu0 }
 0x474   :  { %v764_v9 = vpop.f32.mrf.mxu1  ;;  %v448_v10 = vadd.f32 %v758_v8, %v677_v7 }
 0x475   :  { %v468_v11 = vadd.f32 %v764_v9, %v677_v7  ;;  %v442_v12 = vpop.f32.mrf.mxu0 }
 0x476   :  { %v462_v13 = vpop.f32.mrf.mxu1  ;;  %482 = vst [vmem:[#allocation2 + $0x8] sm:$0xff] %v448_v10  ;;  %v443_v14 = vadd.f32 %v677_v7, %v442_v12 }
 0x477   :  { %486 = vst [vmem:[#allocation2 + $0x28] sm:$0xff] %v468_v11  ;;  %v463_v15 = vadd.f32 %v677_v7, %v462_v13  ;;  %v761_v16 = vpop.f32.mrf.mxu0 }
 0x478   :  { %v767_v17 = vpop.f32.mrf.mxu1  ;;  %481 = vst [vmem:[#allocation2] sm:$0xff] %v443_v14  ;;  %v458_v18 = vadd.f32 %v761_v16, %v677_v7 }
 0x479   :  { %485 = vst [vmem:[#allocation2 + $0x20] sm:$0xff] %v463_v15  ;;  %v478_v19 = vadd.f32 %v767_v17, %v677_v7  ;;  %v452_v20 = vpop.f32.mrf.mxu0 }
 0x47a   :  { %v472_v21 = vpop.f32.mrf.mxu1  ;;  %484 = vst [vmem:[#allocation2 + $0x18] sm:$0xff] %v458_v18  ;;  %v453_v22 = vadd.f32 %v677_v7, %v452_v20 }
 0x47b   :  { %488 = vst [vmem:[#allocation2 + $0x38] sm:$0xff] %v478_v19  ;;  %v473_v23 = vadd.f32 %v677_v7, %v472_v21 }
 0x47c   :  { %483 = vst [vmem:[#allocation2 + $0x10] sm:$0xff] %v453_v22 }
 0x47d   :  { %487 = vst [vmem:[#allocation2 + $0x30] sm:$0xff] %v473_v23 }
 0x47e LB: > { %v504_v24 = vld [vmem:[#allocation6 + $0x18] sm:$0xff]  ;;  %v884_v25 = vmov 0.0   ;;  %v503_v26 = vld [vmem:[#allocation6 + $0x10] sm:$0xff]  ;;  %vm885_vm6 = vmmov 0   ;;  %v502_v27 = vld [vmem:[#allocation6 + $0x8] sm:$0xff]  ;;  %s686_s24 = sshll.u32 %s873_s6, 3  ;;  %s873_s6 = sphi %s1039_s6, %s496_s6  }
 0x47f   : > { %768 = vmatprep.subr.mxu0 %v884_v25  ;;  %776 = vmatprep.mubr.msk.f32.mxu0 %vm885_vm6, %v884_v25  ;;  %v501_v28 = vld [vmem:[#allocation6] sm:$0xff]  ;;  %v500_v29 = vld [vmem:[#allocation4] sm:$0xff]  ;;  %s498_s25 = scalar_lea.vmem [#allocation2], %s686_s24  ;;  %s886_s26 = smov 64   ;;  %v592_v40 = vld [vmem:[#allocation5] sm:$0xff] }
 0x480   : > { %769 = vmatpush3.msra.mxu0 %v504_v24  ;;  %s887_s27 = smov 32   ;;  %s888_s0 = smov 96  }
 0x481   : > { %770 = vmatprep.subr.mxu0 %v884_v25  ;;  %s624_s3 = scalar_lea.vmem [#allocation3], %s686_s24  ;;  %s496_s6 = sadd.s32 1, %s873_s6  }
 0x482   : > { %771 = vmatpush3.msra.mxu0 %v503_v26  ;;  %p493_p6 = scmp.ge.s32.totalorder %s496_s6, 8  }
 0x483   : > { %772 = vmatprep.subr.mxu0 %v884_v25 }
 0x484   : > { %773 = vmatpush3.msra.mxu0 %v502_v27  ;;  %v499_v30 = vld [vmem:[%s498_s25] sm:$0xff] }
 0x485   : > { %774 = vmatprep.subr.mxu0 %v884_v25 }
 0x486   : > { %775 = vmatpush3.msra.mxu0 %v501_v28 }
 0x487   : > { %777 = vmatmul.mubr.msk.f32.vlgmr.msra.gmra.mxu0 %vm195_vm0, %v500_v29 }
 0x547   : > { %v574_v31 = vpop.f32.mrf.mxu0 }
 0x548   : > { %v578_v32 = vadd.f32 %v574_v31, %v499_v30 }
 0x549   : > { %v778_v33 = vpop.f32.mrf.mxu0 }
 0x54a   : > { %v688_v34 = vmul.f32 -1.442695, %v578_v32 }
 0x54c   : > { %829 = vpow2.f32 %v688_v34 }
 0x54d   : > { %831 = vtanh.f32 %v578_v32 }
 0x559   : > { %v830_v35 = vpop.eup %829 }
 0x55a   : > { %v588_v36 = vadd.f32 1.0, %v830_v35  ;;  %v832_v37 = vpop.eup %831 }
 0x55c   : > { %833 = vrcp.f32 %v588_v36 }
 0x569   : > { %v834_v38 = vpop.eup %833 }
 0x56a   : > { %v591_v39 = vsel %vm998_vm5, %v832_v37, %v834_v38 }
 0x56b   : > { %599 = vrot.lane.b32.xlu0 %v591_v39, %s886_s26 }
 0x56f   : > { %594 = vrot.lane.b32.xlu0 %v592_v40, %s887_s27 }
 0x5dd   : > { %v600_v41 = vpop.permute.xlu0 %599 }
 0x5de   : > { %v602_v42 = vmul.f32 %v600_v41, %v591_v39 }
 0x5e0   : > { %604 = vrot.lane.b32.xlu1 %v602_v42, %s887_s27 }
 0x5e1   : > { %v595_v44 = vpop.permute.xlu0 %594 }
 0x5e2   : > { %v597_v45 = vmul.f32 %v595_v44, %v591_v39 }
 0x652   : > { %v605_v46 = vpop.permute.xlu1 %604 }
 0x653   : > { %v607_v47 = vadd.f32 %v605_v46, %v597_v45 }
 0x655   : > { %835 = vtanh.f32 %v607_v47  ;;  %615 = vrot.lane.b32.xlu0 %v607_v47, %s888_s0 }
 0x662   : > { %v836_v48 = vpop.eup %835 }
 0x663   : > { %610 = vrot.lane.b32.xlu1 %v836_v48, %s886_s26 }
 0x6c7   : > { %v616_v49 = vpop.permute.xlu0 %615 }
 0x6c8   : > { %618 = vst.msk [vmem:[#allocation5] sm:$0xff] %vm195_vm0, %v616_v49 }
 0x6d5   : > { %v611_v50 = vpop.permute.xlu1 %610 }
 0x6d6   : > { %v613_v51 = vmul.f32 %v611_v50, %v591_v39 }
 0x6d8   : > { %620 = vrot.lane.b32.xlu1 %v613_v51, %s887_s27 }
 0x747   :  { %495 = sbr.rel (!%p493_p6) target bundleno = 1150 (0x47e), region = 81 }
 0x74a   : > { %v621_v52 = vpop.permute.xlu1 %620 }
 0x74b   : > { %623 = vst.msk [vmem:[#allocation4] sm:$0xff] %vm195_vm0, %v621_v52  ;;  %625 = vst.msk [vmem:[%s624_s3] sm:$0xff] %vm195_vm0, %v621_v52 }
 0x752   :  { %v626_v53 = vld [vmem:[#allocation3] sm:$0xff]  ;;  %v627_v54 = vld [vmem:[#allocation3 + $0x8] sm:$0xff]  ;;  %v628_v55 = vld [vmem:[#allocation3 + $0x10] sm:$0xff] }
 0x753   :  { %634 = vst.msk [vmem:[%s1097_s7] sm:$0xff] %vm195_vm0, %v626_v53  ;;  %635 = vst.msk [vmem:[%s1097_s7 + $0x8] sm:$0xff] %vm195_vm0, %v627_v54  ;;  %v629_v56 = vld [vmem:[#allocation3 + $0x18] sm:$0xff]  ;;  %v630_v57 = vld [vmem:[#allocation3 + $0x20] sm:$0xff] }
 0x754   :  { %636 = vst.msk [vmem:[%s1097_s7 + $0x10] sm:$0xff] %vm195_vm0, %v628_v55  ;;  %v631_v43 = vld [vmem:[#allocation3 + $0x28] sm:$0xff]  ;;  %637 = vst.msk [vmem:[%s1097_s7 + $0x18] sm:$0xff] %vm195_vm0, %v629_v56  ;;  %v632_v58 = vld [vmem:[#allocation3 + $0x30] sm:$0xff] }
 0x755   :  { %638 = vst.msk [vmem:[%s1097_s7 + $0x20] sm:$0xff] %vm195_vm0, %v630_v57  ;;  %639 = vst.msk [vmem:[%s1097_s7 + $0x28] sm:$0xff] %vm195_vm0, %v631_v43  ;;  %v633_v59 = vld [vmem:[#allocation3 + $0x38] sm:$0xff] }
 0x756   :  { %640 = vst.msk [vmem:[%s1097_s7 + $0x30] sm:$0xff] %vm195_vm0, %v632_v58  ;;  %641 = vst.msk [vmem:[%s1097_s7 + $0x38] sm:$0xff] %vm195_vm0, %v633_v59 }
 0x757   :  { %646 = vsyncpa [#allocation7], 1 }

</bundles_post_ra>
